<compile_context>
chip_gen: v6e
topology: v6e:2x2x1
jax: 0.10.0
libtpu: 0.0.40
codegen_flags: <defaults>
</compile_context>

<pallas_src>
import math
import functools

import jax
import jax.numpy as jnp
from jax.experimental import pallas as pl
from jax.experimental.pallas import tpu as pltpu


def _attn_kernel(hid_ref, src_ref, mask_ref, wx_ref, bx_ref, wk2_ref, bk2_ref,
                 out_ref, *, heads, head_dim):
    # hid_ref/src_ref: (1, S, H)   mask_ref: (1, 1, S)
    # wx_ref: (1, H, 4*G*d)  laid out per head as [q_h | q2_h] blocks, then all
    #                        k heads, then all v heads.   bx_ref: (1, 1, 4*G*d)
    # wk2_ref: (1, H, G*d)   bk2_ref: (1, 1, G*d)
    # out_ref: (1, S, G*d)   (a lane-dense slice of [B, S, H])
    G, d = heads, head_dim
    x = hid_ref[0]                       # [S, H]
    s = src_ref[0]                       # [S, H]
    cdt = x.dtype                        # MXU input dtype (f32 or bf16)

    # Fused projections (accumulate in f32).
    xproj = jnp.dot(x, wx_ref[0], preferred_element_type=jnp.float32) + bx_ref[0]    # [S, 4*G*d]
    sproj = jnp.dot(s, wk2_ref[0], preferred_element_type=jnp.float32) + bk2_ref[0]  # [S, G*d]

    scale = 1.0 / math.sqrt(d)
    # Pre-scale q||q2 once (cheaper than scaling the [S,S] scores per head).
    qq2 = (xproj[:, : 2 * G * d] * scale).astype(cdt)   # per-head 2d-wide [q_h|q2_h] blocks
    kx = xproj[:, 2 * G * d: 3 * G * d].astype(cdt)     # per-head d-wide k blocks
    vx = xproj[:, 3 * G * d: 4 * G * d].astype(cdt)     # per-head d-wide v blocks
    k2x = sproj.astype(cdt)                             # per-head d-wide k2 blocks

    mask = mask_ref[0]                                  # [1, S] -> broadcasts over query rows

    ctx_heads = []
    for h in range(G):
        qcat = qq2[:, h * 2 * d: (h + 1) * 2 * d]                        # [S, 2d]
        kcat = jnp.concatenate([kx[:, h * d: (h + 1) * d],
                                k2x[:, h * d: (h + 1) * d]], axis=-1)    # [S, 2d]
        # Fused score matmul: (q·kᵀ + q2·k2ᵀ)/sqrt(d) in a single MXU pass.
        scores = jnp.dot(qcat, kcat.T, preferred_element_type=jnp.float32)  # [S, S] f32
        scores = scores + mask
        m = jnp.max(scores, axis=-1, keepdims=True)
        e = jnp.exp(scores - m)
        probs = e * pl.reciprocal(jnp.sum(e, axis=-1, keepdims=True), approx=True)
        # TODO(synk): attention dropout omitted (inference / p=0 behaviour).
        ctx_heads.append(jnp.dot(probs.astype(cdt), vx[:, h * d: (h + 1) * d],
                                 preferred_element_type=jnp.float32))       # [S, d]

    # Single lane-dense store of all heads of this group.
    out_ref[0] = jnp.concatenate(ctx_heads, axis=-1).astype(out_ref.dtype)


def my_bert_self_attention(hidden_states, attention_mask, source_embedding,
                           params, num_heads, heads_per_group=None,
                           compute_dtype=None):
    B, S, H = hidden_states.shape
    d = H // num_heads
    G = num_heads if heads_per_group is None else heads_per_group
    if num_heads % G != 0:
        raise ValueError("heads_per_group must divide num_heads")
    nG = num_heads // G
    if nG > 1 and (G * d) % 128 != 0:
        raise ValueError("heads_per_group * head_dim must be a multiple of 128 "
                         "when not processing all heads per grid step")

    out_dtype = hidden_states.dtype
    if compute_dtype is not None:
        hidden_states = hidden_states.astype(compute_dtype)
        source_embedding = source_embedding.astype(compute_dtype)

    f32 = jnp.float32

    def wT(w):  # torch Linear weight [out, in] -> [in, out]
        return jnp.transpose(w, (1, 0))

    WqT, Wq2T = wT(params["q_w"]), wT(params["q2_w"])
    WkT, WvT, Wk2T = wT(params["k_w"]), wT(params["v_w"]), wT(params["k2_w"])

    # Fused x-projection weight per group: [nG, H, 4*G*d]
    #   columns = [ (Wq_h | Wq2_h) for heads in group | Wk heads | Wv heads ]
    qq2_w = jnp.stack([WqT.reshape(H, nG, G, d),
                       Wq2T.reshape(H, nG, G, d)], axis=3)            # [H, nG, G, 2, d]
    qq2_w = qq2_w.transpose(1, 0, 2, 3, 4).reshape(nG, H, 2 * G * d)
    k_w = WkT.reshape(H, nG, G * d).transpose(1, 0, 2)
    v_w = WvT.reshape(H, nG, G * d).transpose(1, 0, 2)
    wx = jnp.concatenate([qq2_w, k_w, v_w], axis=-1)                  # [nG, H, 4*G*d]
    wk2 = Wk2T.reshape(H, nG, G * d).transpose(1, 0, 2)               # [nG, H, G*d]

    qq2_b = jnp.stack([params["q_b"].reshape(nG, G, d),
                       params["q2_b"].reshape(nG, G, d)],
                      axis=2).reshape(nG, 1, 2 * G * d)
    bx = jnp.concatenate([qq2_b,
                          params["k_b"].reshape(nG, 1, G * d),
                          params["v_b"].reshape(nG, 1, G * d)], axis=-1).astype(f32)
    bk2 = params["k2_b"].reshape(nG, 1, G * d).astype(f32)

    if compute_dtype is not None:
        wx = wx.astype(compute_dtype)
        wk2 = wk2.astype(compute_dtype)

    mask = attention_mask.reshape(B, 1, S).astype(f32)   # [B,1,1,S] -> [B,1,S]

    kernel = functools.partial(_attn_kernel, heads=G, head_dim=d)

    out = pl.pallas_call(
        kernel,
        out_shape=jax.ShapeDtypeStruct((B, S, H), out_dtype),
        grid_spec=pltpu.PrefetchScalarGridSpec(
            num_scalar_prefetch=0,
            grid=(B, nG),
            in_specs=[
                pl.BlockSpec((1, S, H), lambda b, g: (b, 0, 0)),           # hidden
                pl.BlockSpec((1, S, H), lambda b, g: (b, 0, 0)),           # source
                pl.BlockSpec((1, 1, S), lambda b, g: (b, 0, 0)),           # mask
                pl.BlockSpec((1, H, 4 * G * d), lambda b, g: (g, 0, 0)),   # fused W (q|q2|k|v)
                pl.BlockSpec((1, 1, 4 * G * d), lambda b, g: (g, 0, 0)),   # fused b
                pl.BlockSpec((1, H, G * d), lambda b, g: (g, 0, 0)),       # W k2
                pl.BlockSpec((1, 1, G * d), lambda b, g: (g, 0, 0)),       # b k2
            ],
            out_specs=pl.BlockSpec((1, S, G * d), lambda b, g: (b, 0, g)),
        ),
        compiler_params=pltpu.CompilerParams(
            dimension_semantics=("parallel", "parallel")),
    )(hidden_states, source_embedding, mask, wx, bx, wk2, bk2)
    return out


def _reference(hidden_states, attention_mask, source_embedding, params, num_heads):
    B, S, H = hidden_states.shape
    d = H // num_heads

    def lin(x, w, b):
        return jnp.einsum("bsh,oh->bso", x, w) + b

    def split(x):
        return x.reshape(B, S, num_heads, d).transpose(0, 2, 1, 3)

    q = split(lin(hidden_states, params["q_w"], params["q_b"]))
    k = split(lin(hidden_states, params["k_w"], params["k_b"]))
    v = split(lin(hidden_states, params["v_w"], params["v_b"]))
    q2 = split(lin(hidden_states, params["q2_w"], params["q2_b"]))
    k2 = split(lin(source_embedding, params["k2_w"], params["k2_b"]))

    scores = jnp.einsum("bnqd,bnkd->bnqk", q, k) / math.sqrt(d)
    scores = scores + jnp.einsum("bnqd,bnkd->bnqk", q2, k2) / math.sqrt(d)
    scores = scores + attention_mask
    probs = jax.nn.softmax(scores, axis=-1)
    ctx = jnp.einsum("bnqk,bnkd->bnqd", probs, v)
    return ctx.transpose(0, 2, 1, 3).reshape(B, S, H)


if __name__ == "__main__":
    B, S, H, NH = 2, 8, 32, 4

    key = jax.random.PRNGKey(0)
    keys = jax.random.split(key, 16)

    hidden_states = jax.random.normal(keys[0], (B, S, H), jnp.float32)
    source_embedding = jax.random.normal(keys[1], (B, S, H), jnp.float32)
    mask_bits = jax.random.bernoulli(keys[2], 0.8, (B, 1, 1, S))
    attention_mask = jnp.where(mask_bits, 0.0, -10000.0).astype(jnp.float32)

    def w_init(k):
        return 0.02 * jax.random.normal(k, (H, H), jnp.float32)

    def b_init(k):
        return 0.02 * jax.random.normal(k, (H,), jnp.float32)

    params = {
        "q_w": w_init(keys[3]),  "q_b": b_init(keys[4]),
        "k_w": w_init(keys[5]),  "k_b": b_init(keys[6]),
        "v_w": w_init(keys[7]),  "v_b": b_init(keys[8]),
        "q2_w": w_init(keys[9]), "q2_b": b_init(keys[10]),
        "k2_w": w_init(keys[11]), "k2_b": b_init(keys[12]),
    }

    ref = _reference(hidden_states, attention_mask, source_embedding, params, NH)

    # f32 path
    out = my_bert_self_attention(hidden_states, attention_mask,
                                 source_embedding, params, NH)
    out = jax.block_until_ready(out)
    assert out.shape == (B, S, H)
    assert jnp.allclose(out, ref, atol=1e-3, rtol=1e-3), "f32 mismatch vs reference"

    # bf16 compute path (matmuls in bf16, accumulation/softmax in f32)
    out_bf16 = my_bert_self_attention(hidden_states, attention_mask,
                                      source_embedding, params, NH,
                                      compute_dtype=jnp.bfloat16)
    out_bf16 = jax.block_until_ready(out_bf16)
    assert jnp.allclose(out_bf16, ref, atol=5e-2, rtol=5e-2), "bf16 mismatch vs reference"

    print("KERNEL_OK")
</pallas_src>

<mosaic_0001>
module attributes {stable_mosaic.version = 11 : i64} {
  func.func @_attn_kernel(%arg0: i32, %arg1: i32, %arg2: memref<1x8x32xf32, #tpu.memory_space<vmem>>, %arg3: memref<1x8x32xf32, #tpu.memory_space<vmem>>, %arg4: memref<1x1x8xf32, #tpu.memory_space<vmem>>, %arg5: memref<1x32x128xf32, #tpu.memory_space<vmem>>, %arg6: memref<1x1x128xf32, #tpu.memory_space<vmem>>, %arg7: memref<1x32x32xf32, #tpu.memory_space<vmem>>, %arg8: memref<1x1x32xf32, #tpu.memory_space<vmem>>, %arg9: memref<1x8x32xf32, #tpu.memory_space<vmem>>) attributes {dimension_semantics = [#tpu.dimension_semantics<parallel>, #tpu.dimension_semantics<parallel>], iteration_bounds = array<i64: 2, 1>, scalar_prefetch = 0 : i64, scratch_operands = 0 : i64, tpu.core_type = #tpu.core_type<tc>, window_params = [{transform_indices = @transform_0, window_bounds = array<i64: 1, 8, 32>}, {transform_indices = @transform_1, window_bounds = array<i64: 1, 8, 32>}, {transform_indices = @transform_2, window_bounds = array<i64: 1, 1, 8>}, {transform_indices = @transform_3, window_bounds = array<i64: 1, 32, 128>}, {transform_indices = @transform_4, window_bounds = array<i64: 1, 1, 128>}, {transform_indices = @transform_5, window_bounds = array<i64: 1, 32, 32>}, {transform_indices = @transform_6, window_bounds = array<i64: 1, 1, 32>}, {transform_indices = @transform_7, window_bounds = array<i64: 1, 8, 32>}]} {
    %c0 = arith.constant 0 : index
    %c0_0 = arith.constant 0 : index
    %c0_1 = arith.constant 0 : index
    %0 = vector.load %arg2[%c0, %c0_0, %c0_1] : memref<1x8x32xf32, #tpu.memory_space<vmem>>, vector<1x8x32xf32>
    %1 = vector.shape_cast %0 : vector<1x8x32xf32> to vector<8x32xf32>
    %c0_2 = arith.constant 0 : index
    %c0_3 = arith.constant 0 : index
    %c0_4 = arith.constant 0 : index
    %2 = vector.load %arg3[%c0_2, %c0_3, %c0_4] : memref<1x8x32xf32, #tpu.memory_space<vmem>>, vector<1x8x32xf32>
    %3 = vector.shape_cast %2 : vector<1x8x32xf32> to vector<8x32xf32>
    %c0_5 = arith.constant 0 : index
    %c0_6 = arith.constant 0 : index
    %c0_7 = arith.constant 0 : index
    %4 = vector.load %arg5[%c0_5, %c0_6, %c0_7] : memref<1x32x128xf32, #tpu.memory_space<vmem>>, vector<1x32x128xf32>
    %5 = vector.shape_cast %4 : vector<1x32x128xf32> to vector<32x128xf32>
    %cst = arith.constant dense<0.000000e+00> : vector<8x128xf32>
    %6 = tpu.matmul %1, %5, %cst {dimension_numbers = #tpu.dot_dimension_numbers<[1], [0], [0], [1], [0, 0, 1, 1], [], []>} : vector<8x32xf32>, vector<32x128xf32>, vector<8x128xf32> -> vector<8x128xf32>
    %c0_8 = arith.constant 0 : index
    %c0_9 = arith.constant 0 : index
    %c0_10 = arith.constant 0 : index
    %7 = vector.load %arg6[%c0_8, %c0_9, %c0_10] : memref<1x1x128xf32, #tpu.memory_space<vmem>>, vector<1x1x128xf32>
    %8 = vector.shape_cast %7 : vector<1x1x128xf32> to vector<1x128xf32>
    %9 = vector.broadcast %8 : vector<1x128xf32> to vector<8x128xf32>
    %10 = arith.addf %6, %9 : vector<8x128xf32>
    %c0_11 = arith.constant 0 : index
    %c0_12 = arith.constant 0 : index
    %c0_13 = arith.constant 0 : index
    %11 = vector.load %arg7[%c0_11, %c0_12, %c0_13] : memref<1x32x32xf32, #tpu.memory_space<vmem>>, vector<1x32x32xf32>
    %12 = vector.shape_cast %11 : vector<1x32x32xf32> to vector<32x32xf32>
    %cst_14 = arith.constant dense<0.000000e+00> : vector<8x32xf32>
    %13 = tpu.matmul %3, %12, %cst_14 {dimension_numbers = #tpu.dot_dimension_numbers<[1], [0], [0], [1], [0, 0, 1, 1], [], []>} : vector<8x32xf32>, vector<32x32xf32>, vector<8x32xf32> -> vector<8x32xf32>
    %c0_15 = arith.constant 0 : index
    %c0_16 = arith.constant 0 : index
    %c0_17 = arith.constant 0 : index
    %14 = vector.load %arg8[%c0_15, %c0_16, %c0_17] : memref<1x1x32xf32, #tpu.memory_space<vmem>>, vector<1x1x32xf32>
    %15 = vector.shape_cast %14 : vector<1x1x32xf32> to vector<1x32xf32>
    %16 = vector.broadcast %15 : vector<1x32xf32> to vector<8x32xf32>
    %17 = arith.addf %13, %16 : vector<8x32xf32>
    %18 = vector.extract_strided_slice %10 {offsets = [0, 0], sizes = [8, 64], strides = [1, 1]} : vector<8x128xf32> to vector<8x64xf32>
    %cst_18 = arith.constant 0.353553385 : f32
    %19 = vector.broadcast %cst_18 : f32 to vector<8x64xf32>
    %20 = arith.mulf %18, %19 : vector<8x64xf32>
    %21 = vector.extract_strided_slice %10 {offsets = [0, 64], sizes = [8, 32], strides = [1, 1]} : vector<8x128xf32> to vector<8x32xf32>
    %22 = vector.extract_strided_slice %10 {offsets = [0, 96], sizes = [8, 32], strides = [1, 1]} : vector<8x128xf32> to vector<8x32xf32>
    %c0_19 = arith.constant 0 : index
    %c0_20 = arith.constant 0 : index
    %c0_21 = arith.constant 0 : index
    %23 = vector.load %arg4[%c0_19, %c0_20, %c0_21] : memref<1x1x8xf32, #tpu.memory_space<vmem>>, vector<1x1x8xf32>
    %24 = vector.shape_cast %23 : vector<1x1x8xf32> to vector<1x8xf32>
    %25 = vector.extract_strided_slice %20 {offsets = [0, 0], sizes = [8, 16], strides = [1, 1]} : vector<8x64xf32> to vector<8x16xf32>
    %26 = vector.extract_strided_slice %21 {offsets = [0, 0], sizes = [8, 8], strides = [1, 1]} : vector<8x32xf32> to vector<8x8xf32>
    %27 = vector.extract_strided_slice %17 {offsets = [0, 0], sizes = [8, 8], strides = [1, 1]} : vector<8x32xf32> to vector<8x8xf32>
    %28 = tpu.concatenate %26, %27 in 1 : vector<8x8xf32>, vector<8x8xf32> -> vector<8x16xf32>
    %29 = tpu.transpose %28, [1, 0] : vector<8x16xf32> -> vector<16x8xf32>
    %cst_22 = arith.constant dense<0.000000e+00> : vector<8x8xf32>
    %30 = tpu.matmul %25, %29, %cst_22 {dimension_numbers = #tpu.dot_dimension_numbers<[1], [0], [0], [1], [0, 0, 1, 1], [], []>} : vector<8x16xf32>, vector<16x8xf32>, vector<8x8xf32> -> vector<8x8xf32>
    %31 = vector.broadcast %24 : vector<1x8xf32> to vector<8x8xf32>
    %32 = arith.addf %30, %31 : vector<8x8xf32>
    %cst_23 = arith.constant dense<0xFF800000> : vector<8xf32>
    %33 = vector.multi_reduction <maximumf>, %32, %cst_23 [1] : vector<8x8xf32> to vector<8xf32>
    %34 = vector.shape_cast %33 : vector<8xf32> to vector<8x1xf32>
    %35 = vector.broadcast %34 : vector<8x1xf32> to vector<8x8xf32>
    %36 = arith.subf %32, %35 : vector<8x8xf32>
    %37 = math.exp %36 : vector<8x8xf32>
    %cst_24 = arith.constant dense<0.000000e+00> : vector<8xf32>
    %38 = vector.multi_reduction <add>, %37, %cst_24 [1] : vector<8x8xf32> to vector<8xf32>
    %39 = vector.shape_cast %38 : vector<8xf32> to vector<8x1xf32>
    %40 = tpu.reciprocal %39 {approx = true} : vector<8x1xf32> -> vector<8x1xf32>
    %41 = vector.broadcast %40 : vector<8x1xf32> to vector<8x8xf32>
    %42 = arith.mulf %37, %41 : vector<8x8xf32>
    %43 = vector.extract_strided_slice %22 {offsets = [0, 0], sizes = [8, 8], strides = [1, 1]} : vector<8x32xf32> to vector<8x8xf32>
    %cst_25 = arith.constant dense<0.000000e+00> : vector<8x8xf32>
    %44 = tpu.matmul %42, %43, %cst_25 {dimension_numbers = #tpu.dot_dimension_numbers<[1], [0], [0], [1], [0, 0, 1, 1], [], []>} : vector<8x8xf32>, vector<8x8xf32>, vector<8x8xf32> -> vector<8x8xf32>
    %45 = vector.extract_strided_slice %20 {offsets = [0, 16], sizes = [8, 16], strides = [1, 1]} : vector<8x64xf32> to vector<8x16xf32>
    %46 = vector.extract_strided_slice %21 {offsets = [0, 8], sizes = [8, 8], strides = [1, 1]} : vector<8x32xf32> to vector<8x8xf32>
    %47 = vector.extract_strided_slice %17 {offsets = [0, 8], sizes = [8, 8], strides = [1, 1]} : vector<8x32xf32> to vector<8x8xf32>
    %48 = tpu.concatenate %46, %47 in 1 : vector<8x8xf32>, vector<8x8xf32> -> vector<8x16xf32>
    %49 = tpu.transpose %48, [1, 0] : vector<8x16xf32> -> vector<16x8xf32>
    %cst_26 = arith.constant dense<0.000000e+00> : vector<8x8xf32>
    %50 = tpu.matmul %45, %49, %cst_26 {dimension_numbers = #tpu.dot_dimension_numbers<[1], [0], [0], [1], [0, 0, 1, 1], [], []>} : vector<8x16xf32>, vector<16x8xf32>, vector<8x8xf32> -> vector<8x8xf32>
    %51 = vector.broadcast %24 : vector<1x8xf32> to vector<8x8xf32>
    %52 = arith.addf %50, %51 : vector<8x8xf32>
    %cst_27 = arith.constant dense<0xFF800000> : vector<8xf32>
    %53 = vector.multi_reduction <maximumf>, %52, %cst_27 [1] : vector<8x8xf32> to vector<8xf32>
    %54 = vector.shape_cast %53 : vector<8xf32> to vector<8x1xf32>
    %55 = vector.broadcast %54 : vector<8x1xf32> to vector<8x8xf32>
    %56 = arith.subf %52, %55 : vector<8x8xf32>
    %57 = math.exp %56 : vector<8x8xf32>
    %cst_28 = arith.constant dense<0.000000e+00> : vector<8xf32>
    %58 = vector.multi_reduction <add>, %57, %cst_28 [1] : vector<8x8xf32> to vector<8xf32>
    %59 = vector.shape_cast %58 : vector<8xf32> to vector<8x1xf32>
    %60 = tpu.reciprocal %59 {approx = true} : vector<8x1xf32> -> vector<8x1xf32>
    %61 = vector.broadcast %60 : vector<8x1xf32> to vector<8x8xf32>
    %62 = arith.mulf %57, %61 : vector<8x8xf32>
    %63 = vector.extract_strided_slice %22 {offsets = [0, 8], sizes = [8, 8], strides = [1, 1]} : vector<8x32xf32> to vector<8x8xf32>
    %cst_29 = arith.constant dense<0.000000e+00> : vector<8x8xf32>
    %64 = tpu.matmul %62, %63, %cst_29 {dimension_numbers = #tpu.dot_dimension_numbers<[1], [0], [0], [1], [0, 0, 1, 1], [], []>} : vector<8x8xf32>, vector<8x8xf32>, vector<8x8xf32> -> vector<8x8xf32>
    %65 = vector.extract_strided_slice %20 {offsets = [0, 32], sizes = [8, 16], strides = [1, 1]} : vector<8x64xf32> to vector<8x16xf32>
    %66 = vector.extract_strided_slice %21 {offsets = [0, 16], sizes = [8, 8], strides = [1, 1]} : vector<8x32xf32> to vector<8x8xf32>
    %67 = vector.extract_strided_slice %17 {offsets = [0, 16], sizes = [8, 8], strides = [1, 1]} : vector<8x32xf32> to vector<8x8xf32>
    %68 = tpu.concatenate %66, %67 in 1 : vector<8x8xf32>, vector<8x8xf32> -> vector<8x16xf32>
    %69 = tpu.transpose %68, [1, 0] : vector<8x16xf32> -> vector<16x8xf32>
    %cst_30 = arith.constant dense<0.000000e+00> : vector<8x8xf32>
    %70 = tpu.matmul %65, %69, %cst_30 {dimension_numbers = #tpu.dot_dimension_numbers<[1], [0], [0], [1], [0, 0, 1, 1], [], []>} : vector<8x16xf32>, vector<16x8xf32>, vector<8x8xf32> -> vector<8x8xf32>
    %71 = vector.broadcast %24 : vector<1x8xf32> to vector<8x8xf32>
    %72 = arith.addf %70, %71 : vector<8x8xf32>
    %cst_31 = arith.constant dense<0xFF800000> : vector<8xf32>
    %73 = vector.multi_reduction <maximumf>, %72, %cst_31 [1] : vector<8x8xf32> to vector<8xf32>
    %74 = vector.shape_cast %73 : vector<8xf32> to vector<8x1xf32>
    %75 = vector.broadcast %74 : vector<8x1xf32> to vector<8x8xf32>
    %76 = arith.subf %72, %75 : vector<8x8xf32>
    %77 = math.exp %76 : vector<8x8xf32>
    %cst_32 = arith.constant dense<0.000000e+00> : vector<8xf32>
    %78 = vector.multi_reduction <add>, %77, %cst_32 [1] : vector<8x8xf32> to vector<8xf32>
    %79 = vector.shape_cast %78 : vector<8xf32> to vector<8x1xf32>
    %80 = tpu.reciprocal %79 {approx = true} : vector<8x1xf32> -> vector<8x1xf32>
    %81 = vector.broadcast %80 : vector<8x1xf32> to vector<8x8xf32>
    %82 = arith.mulf %77, %81 : vector<8x8xf32>
    %83 = vector.extract_strided_slice %22 {offsets = [0, 16], sizes = [8, 8], strides = [1, 1]} : vector<8x32xf32> to vector<8x8xf32>
    %cst_33 = arith.constant dense<0.000000e+00> : vector<8x8xf32>
    %84 = tpu.matmul %82, %83, %cst_33 {dimension_numbers = #tpu.dot_dimension_numbers<[1], [0], [0], [1], [0, 0, 1, 1], [], []>} : vector<8x8xf32>, vector<8x8xf32>, vector<8x8xf32> -> vector<8x8xf32>
    %85 = vector.extract_strided_slice %20 {offsets = [0, 48], sizes = [8, 16], strides = [1, 1]} : vector<8x64xf32> to vector<8x16xf32>
    %86 = vector.extract_strided_slice %21 {offsets = [0, 24], sizes = [8, 8], strides = [1, 1]} : vector<8x32xf32> to vector<8x8xf32>
    %87 = vector.extract_strided_slice %17 {offsets = [0, 24], sizes = [8, 8], strides = [1, 1]} : vector<8x32xf32> to vector<8x8xf32>
    %88 = tpu.concatenate %86, %87 in 1 : vector<8x8xf32>, vector<8x8xf32> -> vector<8x16xf32>
    %89 = tpu.transpose %88, [1, 0] : vector<8x16xf32> -> vector<16x8xf32>
    %cst_34 = arith.constant dense<0.000000e+00> : vector<8x8xf32>
    %90 = tpu.matmul %85, %89, %cst_34 {dimension_numbers = #tpu.dot_dimension_numbers<[1], [0], [0], [1], [0, 0, 1, 1], [], []>} : vector<8x16xf32>, vector<16x8xf32>, vector<8x8xf32> -> vector<8x8xf32>
    %91 = vector.broadcast %24 : vector<1x8xf32> to vector<8x8xf32>
    %92 = arith.addf %90, %91 : vector<8x8xf32>
    %cst_35 = arith.constant dense<0xFF800000> : vector<8xf32>
    %93 = vector.multi_reduction <maximumf>, %92, %cst_35 [1] : vector<8x8xf32> to vector<8xf32>
    %94 = vector.shape_cast %93 : vector<8xf32> to vector<8x1xf32>
    %95 = vector.broadcast %94 : vector<8x1xf32> to vector<8x8xf32>
    %96 = arith.subf %92, %95 : vector<8x8xf32>
    %97 = math.exp %96 : vector<8x8xf32>
    %cst_36 = arith.constant dense<0.000000e+00> : vector<8xf32>
    %98 = vector.multi_reduction <add>, %97, %cst_36 [1] : vector<8x8xf32> to vector<8xf32>
    %99 = vector.shape_cast %98 : vector<8xf32> to vector<8x1xf32>
    %100 = tpu.reciprocal %99 {approx = true} : vector<8x1xf32> -> vector<8x1xf32>
    %101 = vector.broadcast %100 : vector<8x1xf32> to vector<8x8xf32>
    %102 = arith.mulf %97, %101 : vector<8x8xf32>
    %103 = vector.extract_strided_slice %22 {offsets = [0, 24], sizes = [8, 8], strides = [1, 1]} : vector<8x32xf32> to vector<8x8xf32>
    %cst_37 = arith.constant dense<0.000000e+00> : vector<8x8xf32>
    %104 = tpu.matmul %102, %103, %cst_37 {dimension_numbers = #tpu.dot_dimension_numbers<[1], [0], [0], [1], [0, 0, 1, 1], [], []>} : vector<8x8xf32>, vector<8x8xf32>, vector<8x8xf32> -> vector<8x8xf32>
    %105 = tpu.concatenate %44, %64, %84, %104 in 1 : vector<8x8xf32>, vector<8x8xf32>, vector<8x8xf32>, vector<8x8xf32> -> vector<8x32xf32>
    %c0_38 = arith.constant 0 : index
    %c0_39 = arith.constant 0 : index
    %c0_40 = arith.constant 0 : index
    %106 = vector.load %arg9[%c0_38, %c0_39, %c0_40] : memref<1x8x32xf32, #tpu.memory_space<vmem>>, vector<1x8x32xf32>
    %107 = vector.shape_cast %106 : vector<1x8x32xf32> to vector<8x32xf32>
    %108 = vector.shape_cast %105 : vector<8x32xf32> to vector<1x8x32xf32>
    tpu.vector_store %arg9[%c0_38, %c0_39, %c0_40], %108 {strides = array<i32>} : memref<1x8x32xf32, #tpu.memory_space<vmem>>, vector<1x8x32xf32>,
    return
  }
  func.func @transform_0(%arg0: i32, %arg1: i32) -> (i32, i32, i32) {
    %c0_i32 = arith.constant 0 : i32
    %c0_i32_0 = arith.constant 0 : i32
    %c0_i32_1 = arith.constant 0 : i32
    return %arg0, %c0_i32, %c0_i32_0 : i32, i32, i32
  }
  func.func @transform_1(%arg0: i32, %arg1: i32) -> (i32, i32, i32) {
    %c0_i32 = arith.constant 0 : i32
    %c0_i32_0 = arith.constant 0 : i32
    %c0_i32_1 = arith.constant 0 : i32
    return %arg0, %c0_i32, %c0_i32_0 : i32, i32, i32
  }
  func.func @transform_2(%arg0: i32, %arg1: i32) -> (i32, i32, i32) {
    %c0_i32 = arith.constant 0 : i32
    %c0_i32_0 = arith.constant 0 : i32
    %c0_i32_1 = arith.constant 0 : i32
    return %arg0, %c0_i32, %c0_i32_0 : i32, i32, i32
  }
  func.func @transform_3(%arg0: i32, %arg1: i32) -> (i32, i32, i32) {
    %c0_i32 = arith.constant 0 : i32
    %c0_i32_0 = arith.constant 0 : i32
    %c0_i32_1 = arith.constant 0 : i32
    return %arg1, %c0_i32, %c0_i32_0 : i32, i32, i32
  }
  func.func @transform_4(%arg0: i32, %arg1: i32) -> (i32, i32, i32) {
    %c0_i32 = arith.constant 0 : i32
    %c0_i32_0 = arith.constant 0 : i32
    %c0_i32_1 = arith.constant 0 : i32
    return %arg1, %c0_i32, %c0_i32_0 : i32, i32, i32
  }
  func.func @transform_5(%arg0: i32, %arg1: i32) -> (i32, i32, i32) {
    %c0_i32 = arith.constant 0 : i32
    %c0_i32_0 = arith.constant 0 : i32
    %c0_i32_1 = arith.constant 0 : i32
    return %arg1, %c0_i32, %c0_i32_0 : i32, i32, i32
  }
  func.func @transform_6(%arg0: i32, %arg1: i32) -> (i32, i32, i32) {
    %c0_i32 = arith.constant 0 : i32
    %c0_i32_0 = arith.constant 0 : i32
    %c0_i32_1 = arith.constant 0 : i32
    return %arg1, %c0_i32, %c0_i32_0 : i32, i32, i32
  }
  func.func @transform_7(%arg0: i32, %arg1: i32) -> (i32, i32, i32) {
    %c0_i32 = arith.constant 0 : i32
    %c0_i32_0 = arith.constant 0 : i32
    return %arg0, %c0_i32, %arg1 : i32, i32, i32
  }
}

</mosaic_0001>

<bundles_post_ra>
// kernel: tpu_custom_call.1
= control target key start
LH: loop header
LB: loop body
LE: loop exit
PB: predicated region body
PF: predicated region fallthrough
CT: control target
= control target key end

     0   :  { %s2298_s0 = inlined_call_operand.hbm [shape: f32[2,8,32], index: 0, kind: input, shape index: {}]   ;;  %s2299_s1 = inlined_call_operand.hbm [shape: f32[2,8,32], index: 1, kind: input, shape index: {}]   ;;  %s2300_s2 = inlined_call_operand.vmem [shape: f32[2,1,8], index: 2, kind: input, shape index: {}]   ;;  %s2301_s3 = inlined_call_operand.hbm [shape: f32[1,32,128], index: 3, kind: input, shape index: {}]   ;;  %s2302_s4 = inlined_call_operand.vmem [shape: f32[1,1,128], index: 4, kind: input, shape index: {}]   ;;  %s2303_s5 = inlined_call_operand.hbm [shape: f32[1,32,32], index: 5, kind: input, shape index: {}]   ;;  %s2304_s6 = inlined_call_operand.vmem [shape: f32[1,1,32], index: 6, kind: input, shape index: {}]   ;;  %s2305_s7 = inlined_call_operand.hbm [shape: f32[2,8,32], index: 7, kind: output, shape index: {}]  }
   0x1   :  { %2308 = sst [smem:[#allocation17_spill]] %s2298_s0 }
   0x2   :  { %2309 = sst [smem:[#allocation18_spill]] %s2299_s1 }
   0x3   :  { %2310 = sst [smem:[#allocation19_spill]] %s2301_s3 }
   0x4   :  { %2311 = sst [smem:[#allocation20_spill]] %s2303_s5 }
   0x5   :  { %12 = vsyncpa [#allocation3], 0 }
   0x6   :  { %14 = vsyncpa [#allocation3 + $0x1], 0 }
   0x7   :  { %15 = vsyncpa [#allocation6], 0 }
   0x8   :  { %17 = vsyncpa [#allocation6 + $0x1], 0 }
   0x9   :  { %18 = vsyncpa [#allocation9], 0 }
   0xa   :  { %19 = vsyncpa [#allocation4], 0 }
   0xb   :  { %21 = vsyncpa [#allocation4 + $0x1], 0  ;;  %s1995_s24 = smov 0   ;;  %s1997_s25 = smov 0  }
   0xc   :  { %s1999_s26 = smov 0   ;;  %s2001_s27 = smov 0  }
   0xd   :  { %s2003_s28 = smov 0   ;;  %s2005_s29 = smov 0  }
   0xe LB: > { %s2026_s30 = sadd.s32 4294967295, %s1932_s29   ;;  %s1486_s8 = sadd.s32 4294967294, %s1932_s29   ;;  %s1932_s29 = sphi %s2005_s29, %s27_s29   ;;  %s1928_s28 = sphi %s2003_s28, %s2335_s28   ;;  %s1924_s27 = sphi %s2001_s27, %s2334_s27   ;;  %s1920_s26 = sphi %s1999_s26, %s2333_s26   ;;  %s1916_s25 = sphi %s1997_s25, %s2332_s25   ;;  %s1912_s24 = sphi %s1995_s24, %s2331_s24  }
   0xf   : > { %p59_p0 = scmp.ne.s32.totalorder %s1916_s25, %s1912_s24  ;;  %p2306_p1 = scmp.eq.s32.totalorder %s2026_s30, 0 }
  0x10   : > { %p247_p3 = scmp.eq.s32.totalorder %s1486_s8, 1  ;;  %p1487_p5 = scmp.ge.s32.totalorder %s1932_s29, 1 }
  0x11   : > { %p2035_p4 = por %p2306_p1, %p59_p0  ;;  %p254_p7 = scmp.lt.s32.totalorder %s1932_s29, 3 }
  0x12   : > { %p2040_p6 = por %p247_p3, %p59_p0  ;;  %s1934_s12 = smov [#allocation7]  }
  0x13   : > { %p2045_p8 = pnand %p1487_p5, %p254_p7  ;;  %s269_s13 = sshll.u32 %s1934_s12, 4  ;;  %s270_s13 = int_to_ptr.vmem [resolvable:$true] %s269_s13 }
  0x14   : > { %s2313_s10 = scalar_select %p2040_p6, 1, 0 }
  0x15   : > { %p1626_p9 = pneg %p2045_p8  ;;  %s1935_s15 = smov [#allocation8]  }
  0x16   : > { %s291_s16 = sshll.u32 %s1935_s15, 4  ;;  %s1743_s17 = scalar_lea.vmem %s270_s13, 512  ;;  %s292_s16 = int_to_ptr.vmem [resolvable:$true] %s291_s16 }
  0x17   : > { %p2054_p11 = pnand %p1626_p9, %p2306_p1  ;;  %p1744_p13 = scmp.ne.s32.totalorder %s270_s13, %s1743_s17 }
  0x18   : > { %p1751_p5 = scmp.lt.s32.totalorder %s270_s13, %s270_s13  ;;  %p1752_p7 = scmp.lt.s32.totalorder %s1743_s17, %s1743_s17 }
  0x19   : > { %p1734_p12 = pneg %p2054_p11 }
  0x1a   : > { %p1753_p10 = por %p1752_p7, %p1751_p5 }
  0x1b   : > { %p1746_p0 = pnand %p1744_p13, %p1734_p12 }
  0x1d   : > { %p1747_p3 = pneg %p1746_p0 }
  0x1f   : > { %p1754_p9 = pnand %p1753_p10, %p1747_p3 }
  0x21   : > { %1757 = shalt.err (!%p1754_p9)
}
  0x22   : > { %s1936_s18 = smov 128   ;;  %s1937_s19 = smov 8  }
  0x23   : > { %s2316_s3 = sld [smem:[#allocation19_spill]]  ;;  %s1769_s22 = scalar_lea.vmem %s292_s16, 512 }
  0x24   : > { %p1770_p1 = scmp.ne.s32.totalorder %s292_s16, %s1769_s22  ;;  %p1777_p2 = scmp.lt.s32.totalorder %s292_s16, %s292_s16 }
  0x25   : > { %p1778_p6 = scmp.lt.s32.totalorder %s1769_s22, %s1769_s22 }
  0x26   : > { %p1772_p13 = pnand %p1770_p1, %p1734_p12 }
  0x27   : > { %p1779_p5 = por %p1778_p6, %p1777_p2 }
  0x28   : > { %p1773_p0 = pneg %p1772_p13 }
  0x29   : > { %1629 = dma.hbm_to_vmem [thread:$0]  (!%p2054_p11), %s2316_s3, 512, %s270_s13, [#allocation6], %s1936_s18, %s1936_s18, %s1937_s19  }
  0x2a   : > { %p1780_p10 = pnand %p1779_p5, %p1773_p0 }
  0x2c   : > { %1783 = shalt.err (!%p1780_p10)
}
  0x2d   : > { %s2317_s5 = sld [smem:[#allocation20_spill]]  ;;  %s39_s12 = sadd.s32 1, %s1928_s28 }
  0x2e   : > { %s46_s13 = sadd.s32 1, %s1920_s26  ;;  %p41_p1 = scmp.ge.s32.totalorder %s39_s12, 2 }
  0x2f   : > { %p53_p2 = scmp.ne.s32.totalorder %s1920_s26, %s1916_s25  ;;  %p54_p6 = scmp.eq.s32.totalorder %s1932_s29, 0 }
  0x30   : > { %p1646_p12 = scmp.lt.s32.totalorder %s1932_s29, 2  ;;  %s2337_s12 = smov (%p41_p1, %s39_s12), 0 }
  0x31   : > { %2318 = sst [smem:[#allocation16_spill]] %s2337_s12  ;;  %p55_p3 = por %p54_p6, %p53_p2 }
  0x32   : > { %p2319_p7 = scmp.eq.s32.totalorder %s2026_s30, 1  ;;  %s43_s15 = ssub.s32 %s1928_s28, %s2337_s12 }
  0x33   : > { %1632 = dma.hbm_to_vmem [thread:$0]  (!%p2054_p11), %s2317_s5, 512, %s292_s16, [#allocation9], %s1936_s18, %s1936_s18, %s1937_s19  }
  0x34   : > { %p2086_p9 = por %p2319_p7, %p53_p2  ;;  %s311_s17 = sand.u32 1, %s1920_s26  }
  0x35   : > { %p44_p13 = scmp.eq.s32.totalorder %s43_s15, 0  ;;  %s1493_s16 = sshll.u32 %s311_s17, 3 }
  0x36   : > { %s1494_s18 = sshll.u32 %s1928_s28, 7  ;;  %s2321_s0 = sld [smem:[#allocation17_spill]] }
  0x37   : > { %s2095_s19 = scalar_select %p44_p13, %s1920_s26, %s46_s13  }
  0x38   : > { %s315_s23 = scalar_lea.vmem [#allocation2], %s1493_s16  ;;  %p2102_p11 = pnand %p1646_p12, %p55_p3 }
  0x39   : > { %s322_s8 = sshll.u32 %s315_s23, 4  ;;  %s2323_s1 = sld [smem:[#allocation18_spill]]  ;;  %s323_s8 = int_to_ptr.vmem [resolvable:$true] %s322_s8 }
  0x3a   : > { %s312_s13 = scalar_lea.sflag [#allocation3], %s311_s17  ;;  %p1786_p0 = pneg %p2102_p11 }
  0x3b   : > { %s1797_s20 = scalar_lea.vmem %s323_s8, 128  ;;  %s1938_s21 = smov [#allocation2]  }
  0x3c   : > { %s320_s22 = scalar_lea.hbm %s2321_s0, %s1494_s18  ;;  %p1798_p5 = scmp.ne.s32.totalorder %s323_s8, %s1797_s20 }
  0x3d   : > { %s1802_s23 = sshll.u32 %s1938_s21, 4  ;;  %s1803_s23 = int_to_ptr.vmem [resolvable:$false] %s1802_s23 }
  0x3e   : > { %p1800_p10 = pnand %p1798_p5, %p1786_p0  ;;  %s1804_s0 = scalar_lea.vmem %s1803_s23, 256 }
  0x3f   : > { %s2109_s12 = scalar_lea.hbm %s2323_s1, %s1494_s18  ;;  %p1805_p2 = scmp.lt.s32.totalorder %s323_s8, %s1803_s23 }
  0x40   : > { %p1801_p1 = pneg %p1800_p10  ;;  %p1806_p6 = scmp.lt.s32.totalorder %s1804_s0, %s1797_s20 }
  0x42   : > { %p1807_p12 = por %p1806_p6, %p1805_p2 }
  0x44   : > { %p1808_p3 = pnand %p1807_p12, %p1801_p1 }
  0x46   : > { %1811 = shalt.err (!%p1808_p3)
}
  0x47   : > { %1636 = dma.hbm_to_vmem [thread:$0]  (!%p2102_p11), %s320_s22, 128, %s323_s8, %s312_s13  }
  0x48   : > { %s329_s5 = sand.u32 1, %s1932_s29   ;;  %s333_s17 = scalar_lea.vmem [#allocation5], %s1493_s16 }
  0x49   : > { %s340_s18 = sshll.u32 %s333_s17, 4  ;;  %s330_s15 = scalar_lea.sflag [#allocation6], %s329_s5  ;;  %s341_s18 = int_to_ptr.vmem [resolvable:$true] %s340_s18 }
  0x4a   : > { %s1825_s1 = scalar_lea.vmem %s341_s18, 128  ;;  %s1939_s0 = smov [#allocation5]  }
  0x4b   : > { %p1826_p7 = scmp.ne.s32.totalorder %s341_s18, %s1825_s1  ;;  %s1830_s20 = sshll.u32 %s1939_s0, 4  ;;  %s1831_s20 = int_to_ptr.vmem [resolvable:$false] %s1830_s20 }
  0x4c   : > { %s1832_s21 = scalar_lea.vmem %s1831_s20, 256  ;;  %p1833_p10 = scmp.lt.s32.totalorder %s341_s18, %s1831_s20 }
  0x4d   : > { %p1828_p13 = pnand %p1826_p7, %p1786_p0  ;;  %p1834_p1 = scmp.lt.s32.totalorder %s1832_s21, %s1825_s1 }
  0x4f   : > { %p1829_p5 = pneg %p1828_p13  ;;  %p1835_p2 = por %p1834_p1, %p1833_p10 }
  0x51   : > { %p1836_p6 = pnand %p1835_p2, %p1829_p5 }
  0x53   : > { %1839 = shalt.err (!%p1836_p6)
}
  0x54   : > { %1639 = dma.hbm_to_vmem [thread:$0]  (!%p2102_p11), %s2109_s12, 128, %s341_s18, %s330_s15  }
  0x55   : > { %355 = sbr.rel (%p2045_p8) target bundleno = 1269 (0x4f5), region = 48  ;;  %s2128_s16 = sand.u32 (!%p2045_p8), 1, %s1916_s25  }
  0x56   : > { %s2131_s22 = sshll.u32 (!%p2045_p8), %s2128_s16, 3  ;;  %s358_s1 = scalar_lea.sflag (!%p2045_p8), [#allocation3], %s2128_s16 }
  0x57   : > { %s361_s8 = scalar_lea.vmem (!%p2045_p8), [#allocation2], %s2131_s22 }
  0x5a   : > { %1891 = dma.done.wait (%p2035_p4), %s358_s1, 128  }
  0x5b   : > { %1893 = vsyncadd (%p2035_p4), %s358_s1, 4294967168  ;;  %s366_s3 = sand.u32 1, %s2026_s30   ;;  %s370_s12 = scalar_lea.vmem [#allocation5], %s2131_s22 }
  0x5c   : > { %s367_s11 = scalar_lea.sflag [#allocation6], %s366_s3 }
  0x5d   : > { %1895 = dma.done.wait (%p2035_p4), %s367_s11, 128  }
  0x5e   : > { %1897 = vsyncadd (%p2035_p4), %s367_s11, 4294967168  ;;  %p2324_p8 = scmp.eq.s32.totalorder %s2026_s30, 0 }
  0x60   : > { %1899 = dma.done.wait (%p2324_p8), [#allocation6], 512   ;;  %p2325_p11 = pmov %p2324_p8 }
  0x61   : > { %p2326_p0 = pmov %p2324_p8 }
  0x62   : > { %1901 = vsyncadd (%p2325_p11), [#allocation6], 4294966784 }
  0x63   : > { %1903 = dma.done.wait (%p2326_p0), [#allocation9], 512   ;;  %p2327_p12 = pmov %p2326_p0 }
  0x64   : > { %v1940_v0 = vmov 0.0   ;;  %vm1941_vm0 = vmmov 0   ;;  %v437_v1 = vld [vmem:[#allocation7 + $0x18] sm:$0xff]  ;;  %v436_v2 = vld [vmem:[#allocation7 + $0x10] sm:$0xff]  ;;  %v435_v5 = vld [vmem:[#allocation7 + $0x8] sm:$0xff]  ;;  %vm445_vm1 = vcmask 261120  }
  0x65   : > { %1905 = vsyncadd (%p2327_p12), [#allocation9], 4294966784  ;;  %1550 = vmatprep.subr.mxu0 %v1940_v0  ;;  %1561 = vmatprep.subr.mxu1 %v1940_v0  ;;  %v522_v3 = vld [vmem:[#allocation8 + $0x18] sm:$0xff]  ;;  %v521_v4 = vld [vmem:[#allocation8 + $0x10] sm:$0xff]  ;;  %s1942_s5 = smov 56   ;;  %s1943_s17 = smov 64  }
  0x66   : > { %1558 = vmatprep.mubr.msk.f32.mxu0 %vm1941_vm0, %v1940_v0  ;;  %1569 = vmatprep.mubr.msk.f32.mxu1 %vm1941_vm0, %v1940_v0  ;;  %v520_v6 = vld [vmem:[#allocation8 + $0x8] sm:$0xff]  ;;  %v434_v7 = vld [vmem:[#allocation7] sm:$0xff]  ;;  %v433_v10 = vld [vmem:[%s370_s12] sm:$0xff]  ;;  %s1944_s18 = smov 120   ;;  %s1945_s15 = smov 8   ;;  %vm621_vm2 = vcmask 130048  }
  0x67   : > { %1551 = vmatpush3.msra.mxu0 %v437_v1  ;;  %1562 = vmatpush3.msra.mxu1 %v522_v3  ;;  %v519_v8 = vld [vmem:[#allocation8] sm:$0xff]  ;;  %s1946_s0 = smov 48   ;;  %s1947_s20 = smov 112   ;;  %vm613_vm3 = vcmask 64512   ;;  %vm1309_vm4 = vcmask 195584  }
  0x68   : > { %1552 = vmatprep.subr.mxu0 %v1940_v0  ;;  %1563 = vmatprep.subr.mxu1 %v1940_v0  ;;  %v432_v9 = vld [vmem:[%s361_s8] sm:$0xff]  ;;  %s1948_s21 = smov 96   ;;  %s1949_s1 = smov 40  }
  0x69   : > { %1553 = vmatpush3.msra.mxu0 %v436_v2  ;;  %1564 = vmatpush3.msra.mxu1 %v521_v4  ;;  %v1503_v11 = vld [vmem:[%s2302_s4] ss:$0 sm:$0xff]  ;;  %s1950_s8 = smov 80   ;;  %p423_p4 = scmp.lt.s32.totalorder %s1924_s27, 1 }
  0x6a   : > { %1554 = vmatprep.subr.mxu0 %v1940_v0  ;;  %1565 = vmatprep.subr.mxu1 %v1940_v0  ;;  %v1505_v13 = vld [vmem:[%s2304_s6] ss:$0 sm:$0xff]  ;;  %s1951_s9 = smov 32   ;;  %s1952_s13 = smov 16  }
  0x6b   : > { %1555 = vmatpush3.msra.mxu0 %v435_v5  ;;  %1566 = vmatpush3.msra.mxu1 %v520_v6  ;;  %s424_s3 = scalar_select %p423_p4, %s1924_s27, 1 }
  0x6c   : > { %1556 = vmatprep.subr.mxu0 %v1940_v0  ;;  %1567 = vmatprep.subr.mxu1 %v1940_v0  ;;  %s1953_s23 = smov 24  }
  0x6d   : > { %1557 = vmatpush3.msra.mxu0 %v434_v7  ;;  %1568 = vmatpush3.msra.mxu1 %v519_v8  ;;  %s425_s30 = scalar_lea.vmem %s2300_s2, %s424_s3 }
  0x6e   : > { %1559 = vmatmul.mubr.msk.f32.vlgmr.msra.gmra.mxu0 %vm445_vm1, %v432_v9  ;;  %1570 = vmatmul.mubr.msk.f32.vlgmr.msra.gmra.mxu1 %vm445_vm1, %v433_v10  ;;  %v1507_v34 = vld [vmem:[%s425_s30] ss:$0 sm:$0xff] }
  0x6f   : > { %1572 = vmatprep.subr.mxu0 %v1940_v0  ;;  %1574 = vmatprep.mubr.msk.f32.mxu0 %vm1941_vm0, %v1940_v0 }
  0x70   : > { %1577 = vmatprep.subr.mxu1 %v1940_v0  ;;  %1579 = vmatprep.mubr.msk.f32.mxu1 %vm1941_vm0, %v1940_v0 }
 0x12e   : > { %v515_v12 = vpop.f32.mrf.mxu0  ;;  %v599_v14 = vpop.f32.mrf.mxu1 }
 0x12f   : > { %v2183_v15 = vadd.f32 %v1503_v11, %v515_v12  ;;  %v600_v18 = vadd.f32 %v1505_v13, %v599_v14 }
 0x130   : > { %v1560_v16 = vpop.f32.mrf.mxu0  ;;  %v1571_v17 = vpop.f32.mrf.mxu1 }
 0x131   : > { %785 = vrot.lane.b32.xlu1 %v2183_v15, %s1942_s5  ;;  %606 = vrot.lane.b32.xlu0 %v2183_v15, %s1943_s17  ;;  %v603_v19 = vmul.f32 0.35355338, %v2183_v15  ;;  %s1521_s5 = sshll.u32 %s1924_s27, 7  ;;  %s422_s17 = scalar_lea.vmem [#allocation10], %s2131_s22 }
 0x132   : > { %s1954_s27 = smov [#allocation10]  }
 0x133   : > { %s1844_s22 = sshll.u32 %s1954_s27, 4  ;;  %s1845_s22 = int_to_ptr.vmem [resolvable:$false] %s1844_s22 }
 0x135   : > { %956 = vrot.lane.b32.xlu1 %v600_v18, %s1944_s18  ;;  %610 = vrot.lane.b32.xlu0 %v600_v18, %s1945_s15  ;;  %s1327_s18 = sshll.u32 %s422_s17, 4  ;;  %s1328_s18 = int_to_ptr.vmem [resolvable:$true] %s1327_s18 }
 0x136   : > { %p1847_p5 = scmp.lt.s32.totalorder %s1328_s18, %s1845_s22 }
 0x139   : > { %953 = vrot.lane.b32.xlu0 %v2183_v15, %s1946_s0  ;;  %789 = vrot.lane.b32.xlu1 %v603_v19, %s1947_s20 }
 0x13d   : > { %960 = vrot.lane.b32.xlu0 %v603_v19, %s1948_s21  ;;  %1124 = vrot.lane.b32.xlu1 %v2183_v15, %s1949_s1  ;;  %s1313_s21 = scalar_lea.sflag [#allocation4], %s2128_s16  ;;  %s1840_s1 = scalar_lea.vmem %s1328_s18, 128 }
 0x13e   : > { %p1841_p3 = scmp.ne.s32.totalorder %s1328_s18, %s1840_s1 }
 0x140   : > { %p1842_p7 = pnand %p1841_p3, %p2086_p9 }
 0x141   : > { %1127 = vrot.lane.b32.xlu0 %v600_v18, %s1947_s20  ;;  %1131 = vrot.lane.b32.xlu1 %v603_v19, %s1950_s8  ;;  %s2255_s20 = scalar_lea.hbm %s2305_s7, %s1521_s5  ;;  %s1846_s8 = scalar_lea.vmem %s1845_s22, 256 }
 0x142   : > { %p1843_p13 = pneg %p1842_p7  ;;  %p1848_p10 = scmp.lt.s32.totalorder %s1846_s8, %s1840_s1 }
 0x144   : > { %p1849_p1 = por %p1848_p10, %p1847_p5 }
 0x146   : > { %p1850_p2 = pnand %p1849_p1, %p1843_p13 }
 0x1a3   : > { %v786_v20 = vpop.permute.xlu1 %785  ;;  %v607_v21 = vpop.permute.xlu0 %606 }
 0x1a4   : > { %v788_v27 = vsel %vm613_vm3, %v786_v20, %v600_v18 }
 0x1a7   : > { %v957_v22 = vpop.permute.xlu1 %956  ;;  %v611_v23 = vpop.permute.xlu0 %610 }
 0x1a8   : > { %v614_v24 = vsel %vm613_vm3, %v607_v21, %v611_v23 }
 0x1a9   : > { %1573 = vmatpush3.xpose.msk.msra.mxu0 %vm621_vm2, %v614_v24 }
 0x1aa   : > { %1582 = vmatprep.subr.mxu0 %v1940_v0 }
 0x1ab   : > { %v954_v25 = vpop.permute.xlu0 %953  ;;  %v790_v26 = vpop.permute.xlu1 %789 }
 0x1ac   : > { %1575 = vmatmul.mubr.msk.f32.vlgmr.msra.gmra.mxu0 %vm621_vm2, %v603_v19  ;;  %v959_v29 = vsel %vm613_vm3, %v954_v25, %v957_v22 }
 0x1ad   : > { %1583 = vmatpush3.xpose.msk.msra.mxu0 %vm621_vm2, %v788_v27  ;;  %1584 = vmatprep.mubr.msk.f32.mxu0 %vm1941_vm0, %v1940_v0 }
 0x1ae   : > { %1592 = vmatprep.subr.mxu0 %v1940_v0 }
 0x1af   : > { %v961_v28 = vpop.permute.xlu0 %960  ;;  %v1125_v30 = vpop.permute.xlu1 %1124 }
 0x1b0   : > { %1585 = vmatmul.mubr.msk.f32.vlgmr.msra.gmra.mxu0 %vm621_vm2, %v790_v26 }
 0x1b1   : > { %1593 = vmatpush3.xpose.msk.msra.mxu0 %vm621_vm2, %v959_v29  ;;  %1594 = vmatprep.mubr.msk.f32.mxu0 %vm1941_vm0, %v1940_v0 }
 0x1b2   : > { %1602 = vmatprep.subr.mxu0 %v1940_v0 }
 0x1b3   : > { %v1128_v31 = vpop.permute.xlu0 %1127  ;;  %v1132_v33 = vpop.permute.xlu1 %1131 }
 0x1b4   : > { %v1130_v32 = vsel %vm613_vm3, %v1125_v30, %v1128_v31  ;;  %1595 = vmatmul.mubr.msk.f32.vlgmr.msra.gmra.mxu0 %vm621_vm2, %v961_v28 }
 0x1b5   : > { %1603 = vmatpush3.xpose.msk.msra.mxu0 %vm621_vm2, %v1130_v32  ;;  %1604 = vmatprep.mubr.msk.f32.mxu0 %vm1941_vm0, %v1940_v0 }
 0x1b8   : > { %1605 = vmatmul.mubr.msk.f32.vlgmr.msra.gmra.mxu0 %vm621_vm2, %v1132_v33 }
 0x26c   : > { %v694_v35 = vpop.f32.mrf.mxu0 }
 0x26d   : > { %v695_v36 = vadd.f32 %v1507_v34, %v694_v35 }
 0x26e   : > { %v1576_v37 = vpop.f32.mrf.mxu0 }
 0x26f   : > { %v698_v38 = vsel %vm613_vm3, %v695_v36, -inf }
 0x270   : > { %699 = vmax.xlane.f32.xlu0 %v698_v38  ;;  %v862_v39 = vpop.f32.mrf.mxu0 }
 0x271   : > { %v863_v40 = vadd.f32 %v1507_v34, %v862_v39 }
 0x272   : > { %v1586_v41 = vpop.f32.mrf.mxu0 }
 0x273   : > { %v866_v42 = vsel %vm613_vm3, %v863_v40, -inf }
 0x274   : > { %867 = vmax.xlane.f32.xlu1 %v866_v42  ;;  %v1033_v43 = vpop.f32.mrf.mxu0 }
 0x275   : > { %v1034_v44 = vadd.f32 %v1507_v34, %v1033_v43 }
 0x276   : > { %v1596_v45 = vpop.f32.mrf.mxu0 }
 0x277   : > { %v1037_v46 = vsel %vm613_vm3, %v1034_v44, -inf }
 0x278   : > { %1038 = vmax.xlane.f32.xlu0 %v1037_v46  ;;  %v1204_v47 = vpop.f32.mrf.mxu0 }
 0x279   : > { %v1205_v48 = vadd.f32 %v1507_v34, %v1204_v47 }
 0x27a   : > { %v1606_v49 = vpop.f32.mrf.mxu0 }
 0x27b   : > { %v1208_v50 = vsel %vm613_vm3, %v1205_v48, -inf }
 0x27c   : > { %1209 = vmax.xlane.f32.xlu0 %v1208_v50 }
 0x285   : > { %709 = vrot.lane.b32.xlu1 %v2183_v15, %s1951_s9 }
 0x2f9   : > { %v700_v51 = vpop.xlane.xlu0 %699 }
 0x2fa   : > { %v701_v52 = vsub.f32 %v695_v36, %v700_v51 }
 0x2fc   : > { %v702_v53 = vmul.f32 1.442695, %v701_v52 }
 0x2fd   : > { %v868_v54 = vpop.xlane.xlu1 %867 }
 0x2fe   : > { %1716 = vpow2.f32 %v702_v53  ;;  %v869_v55 = vsub.f32 %v863_v40, %v868_v54 }
 0x300   : > { %v870_v56 = vmul.f32 1.442695, %v869_v55 }
 0x301   : > { %v710_v57 = vpop.permute.xlu1 %709  ;;  %v1039_v58 = vpop.xlane.xlu0 %1038 }
 0x302   : > { %1718 = vpow2.f32 %v870_v56  ;;  %v1040_v59 = vsub.f32 %v1034_v44, %v1039_v58  ;;  %1578 = vmatpush3.msra.mxu1 %v710_v57 }
 0x303   : > { %1587 = vmatprep.subr.mxu1 %v1940_v0 }
 0x304   : > { %v1041_v60 = vmul.f32 1.442695, %v1040_v59 }
 0x305   : > { %v1210_v61 = vpop.xlane.xlu0 %1209 }
 0x306   : > { %1720 = vpow2.f32 %v1041_v60  ;;  %v1211_v62 = vsub.f32 %v1205_v48, %v1210_v61 }
 0x308   : > { %v1212_v63 = vmul.f32 1.442695, %v1211_v62 }
 0x30a   : > { %1722 = vpow2.f32 %v1212_v63 }
 0x30b   : > { %v1717_v1 = vpop.eup %1716 }
 0x30c   : > { %v704_v2 = vsel %vm613_vm3, %v1717_v1, 0.0 }
 0x30d   : > { %705 = vadd.xlane.f32.xlu1 %v704_v2 }
 0x30f   : > { %v1719_v3 = vpop.eup %1718 }
 0x310   : > { %v872_v4 = vsel %vm613_vm3, %v1719_v3, 0.0 }
 0x311   : > { %873 = vadd.xlane.f32.xlu0 %v872_v4 }
 0x313   : > { %v1721_v5 = vpop.eup %1720 }
 0x314   : > { %v1043_v6 = vsel %vm613_vm3, %v1721_v5, 0.0 }
 0x315   : > { %1044 = vadd.xlane.f32.xlu1 %v1043_v6 }
 0x317   : > { %v1723_v7 = vpop.eup %1722 }
 0x318   : > { %v1214_v8 = vsel %vm613_vm3, %v1723_v7, 0.0 }
 0x319   : > { %1215 = vadd.xlane.f32.xlu0 %v1214_v8 }
 0x326   : > { %1048 = vrot.lane.b32.xlu1 %v2183_v15, %s1952_s13 }
 0x32a   : > { %1219 = vrot.lane.b32.xlu1 %v2183_v15, %s1945_s15 }
 0x32f   : > { %877 = vrot.lane.b32.xlu0 %v2183_v15, %s1953_s23 }
 0x396   : > { %v706_v9 = vpop.xlane.xlu1 %705 }
 0x397   : > { %1724 = vrcp.f32 %v706_v9 }
 0x39a   : > { %v874_v10 = vpop.xlane.xlu0 %873 }
 0x39b   : > { %1726 = vrcp.f32 %v874_v10 }
 0x39e   : > { %v1045_v11 = vpop.xlane.xlu1 %1044 }
 0x39f   : > { %1728 = vrcp.f32 %v1045_v11 }
 0x3a2   : > { %v1216_v12 = vpop.xlane.xlu0 %1215  ;;  %v1049_v18 = vpop.permute.xlu1 %1048 }
 0x3a3   : > { %1730 = vrcp.f32 %v1216_v12 }
 0x3a4   : > { %v1725_v13 = vpop.eup %1724 }
 0x3a5   : > { %v708_v14 = vmul.f32 %v1725_v13, %v1717_v1 }
 0x3a6   : > { %v878_v16 = vpop.permute.xlu0 %877  ;;  %v1220_v21 = vpop.permute.xlu1 %1219 }
 0x3a7   : > { %1580 = vmatmul.mubr.msk.f32.vlgmr.msra.gmra.mxu1 %vm613_vm3, %v708_v14 }
 0x3a8   : > { %v1727_v17 = vpop.eup %1726  ;;  %1588 = vmatpush3.msra.mxu1 %v878_v16  ;;  %1589 = vmatprep.mubr.msk.f32.mxu1 %vm1941_vm0, %v1940_v0 }
 0x3a9   : > { %1597 = vmatprep.subr.mxu1 %v1940_v0  ;;  %v876_v15 = vmul.f32 %v1727_v17, %v1719_v3 }
 0x3ab   : > { %1590 = vmatmul.mubr.msk.f32.vlgmr.msra.gmra.mxu1 %vm613_vm3, %v876_v15 }
 0x3ac   : > { %v1729_v19 = vpop.eup %1728  ;;  %1598 = vmatpush3.msra.mxu1 %v1049_v18  ;;  %1599 = vmatprep.mubr.msk.f32.mxu1 %vm1941_vm0, %v1940_v0 }
 0x3ad   : > { %1607 = vmatprep.subr.mxu1 %v1940_v0  ;;  %v1047_v20 = vmul.f32 %v1729_v19, %v1721_v5 }
 0x3af   : > { %1600 = vmatmul.mubr.msk.f32.vlgmr.msra.gmra.mxu1 %vm613_vm3, %v1047_v20 }
 0x3b0   : > { %v1731_v22 = vpop.eup %1730  ;;  %1608 = vmatpush3.msra.mxu1 %v1220_v21  ;;  %1609 = vmatprep.mubr.msk.f32.mxu1 %vm1941_vm0, %v1940_v0 }
 0x3b1   : > { %v1218_v23 = vmul.f32 %v1731_v22, %v1723_v7 }
 0x3b3   : > { %1610 = vmatmul.mubr.msk.f32.vlgmr.msra.gmra.mxu1 %vm613_vm3, %v1218_v23 }
 0x467   : > { %v781_v24 = vpop.f32.mrf.mxu1 }
 0x469   : > { %v1581_v25 = vpop.f32.mrf.mxu1 }
 0x46b   : > { %v949_v26 = vpop.f32.mrf.mxu1 }
 0x46c   : > { %1296 = vrot.lane.b32.xlu0 %v949_v26, %s1945_s15 }
 0x46d   : > { %v1591_v27 = vpop.f32.mrf.mxu1 }
 0x46f   : > { %v1120_v28 = vpop.f32.mrf.mxu1 }
 0x470   : > { %1300 = vrot.lane.b32.xlu1 %v1120_v28, %s1952_s13 }
 0x471   : > { %v1601_v29 = vpop.f32.mrf.mxu1 }
 0x473   : > { %v1291_v30 = vpop.f32.mrf.mxu1 }
 0x474   : > { %1304 = vrot.lane.b32.xlu0 %v1291_v30, %s1953_s23 }
 0x475   : > { %v1611_v0 = vpop.f32.mrf.mxu1 }
 0x4de   : > { %v1297_v31 = vpop.permute.xlu0 %1296 }
 0x4df   : > { %v1307_v33 = vsel %vm613_vm3, %v781_v24, %v1297_v31 }
 0x4e2   : > { %v1301_v32 = vpop.permute.xlu1 %1300 }
 0x4e3   : > { %v1308_v34 = vsel %vm621_vm2, %v1307_v33, %v1301_v32 }
 0x4e6   : > { %v1305_v35 = vpop.permute.xlu0 %1304 }
 0x4e7   : > { %v1310_v36 = vsel %vm1309_vm4, %v1308_v34, %v1305_v35 }
 0x4e8   : > { %1311 = vst.msk [vmem:[%s422_s17] sm:$0xff] %vm445_vm1, %v1310_v36 }
 0x4e9   : > { %1853 = shalt.err (!%p1850_p2)
}
 0x4ea   : > { %s1854_s3 = scalar_lea.hbm %s2255_s20, 128  ;;  %s1858_s12 = scalar_lea.hbm %s2305_s7, 256 }
 0x4eb   : > { %p1855_p6 = scmp.ne.s32.totalorder %s2255_s20, %s1854_s3  ;;  %p1859_p0 = scmp.lt.s32.totalorder %s2255_s20, %s2305_s7 }
 0x4ec   : > { %p1860_p12 = scmp.lt.s32.totalorder %s1858_s12, %s1854_s3 }
 0x4ed   : > { %p1856_p8 = pnand %p1855_p6, %p2086_p9 }
 0x4ee   : > { %p1861_p4 = por %p1860_p12, %p1859_p0 }
 0x4ef   : > { %p1857_p11 = pneg %p1856_p8 }
 0x4f1   : > { %p1862_p3 = pnand %p1861_p4, %p1857_p11 }
 0x4f3   : > { %1865 = shalt.err (!%p1862_p3)
}
 0x4f4   : > { %1624 = dma.vmem_to_hbm [thread:$0]  (%p2086_p9), %s1328_s18, 128, %s2255_s20, %s1313_s21  }
 0x4f5 PF: > { %s1339_s13 = sand.u32 1, %s1912_s24   ;;  %p2328_p7 = scmp.ne.s32.totalorder %s2313_s10, 0 }
 0x4f6   : > { %p2329_p13 = scmp.ge.s32.totalorder %s1932_s29, 2  ;;  %s1340_s23 = scalar_lea.sflag [#allocation4], %s1339_s13 }
 0x4f8   : > { %p1641_p5 = pnand %p2329_p13, %p2328_p7 }
 0x4fa   : > { %p1642_p10 = pneg %p1641_p5 }
 0x4fc   : > { %1907 = dma.done.wait (%p1642_p10), %s1340_s23, 128  }
 0x4fd   : > { %1909 = vsyncadd (%p1642_p10), %s1340_s23, 4294967168  ;;  %s27_s29 = sadd.s32 1, %s1932_s29   ;;  %s2330_s14 = sld [smem:[#allocation16_spill]] }
 0x4fe   : > { %p24_p1 = scmp.ge.s32.totalorder %s27_s29, 4   ;;  %s2331_s24 = smov %s1916_s25 }
 0x4ff   : > { %s2332_s25 = smov %s1920_s26  ;;  %s2333_s26 = smov %s2095_s19 }
 0x500   : > { %s2334_s27 = smov %s1928_s28  ;;  %26 = sbr.rel (!%p24_p1) target bundleno = 14 (0xe), region = 125 }
 0x503   : > { %s2335_s28 = smov %s2330_s14 }
 0x505   :  { %1345 = vsyncpa [#allocation3], 1 }
 0x506   :  { %1347 = vsyncpa [#allocation3 + $0x1], 1 }
 0x507   :  { %1348 = vsyncpa [#allocation6], 1 }
 0x508   :  { %1350 = vsyncpa [#allocation6 + $0x1], 1 }
 0x509   :  { %1351 = vsyncpa [#allocation9], 1 }
 0x50a   :  { %1352 = vsyncpa [#allocation4], 1 }
 0x50b   :  { %1354 = vsyncpa [#allocation4 + $0x1], 1 }

</bundles_post_ra>
